<compile_context>
chip_gen: v6e
topology: v6e:2x2x1
jax: 0.10.0
libtpu: 0.0.40
codegen_flags: <defaults>
</compile_context>

<pallas_src>
import jax
import jax.numpy as jnp
from jax.experimental import pallas as pl
from jax.experimental.pallas import tpu as pltpu


def _conv1x1_hardswish_kernel(w_ref, b_ref, x_ref, o_ref):
    """Pointwise conv + hardswish on one lane-dense pixel tile.

    w_ref : VMEM (Cout, Cin)  -- resident across the whole grid
    b_ref : VMEM (Cout, 1)    -- resident across the whole grid
    x_ref : VMEM (Cin, T)     -- pixels along the lane axis
    o_ref : VMEM (Cout, T)
    """
    cin = x_ref.shape[0]
    x = x_ref[...]                                    # (Cin, T)
    w = w_ref[...]                                    # (Cout, Cin)
    # Dense (Cout, T) accumulation: (Cout,1) weight column (lane-broadcast)
    # times (1,T) input row (sublane-broadcast), one term per input channel.
    v1 = b_ref[...] + w[:, 0:1] * x[0:1, :]
    for ci in range(1, cin):
        v1 = v1 + w[:, ci:ci + 1] * x[ci:ci + 1, :]
    v4 = jnp.clip(v1 + 3.0, 0.0, 6.0)                 # clamp_min(0), clamp_max(6)
    o_ref[...] = v1 * (v4 * (1.0 / 6.0))              # multiply by 1/6 (no divide)


def _round_up(v, m):
    return ((v + m - 1) // m) * m


def _pick_pixel_tile(num_pixels, n_batch, max_tile=64 * 1024):
    """Lane-dense pixel tile: multiple of 128, multi-MB per grid step, and at
    least two pixel tiles when N == 1 (so both v7x TensorCores get work)."""
    n_tiles = max(1, pl.cdiv(num_pixels, max_tile))
    if n_batch == 1:
        n_tiles = max(n_tiles, 2)
    t = _round_up(pl.cdiv(num_pixels, n_tiles), 128)
    if t >= num_pixels:
        return num_pixels            # single block == full dim (always legal)
    return t


def conv1x1_hardswish(x_nchw, weight, bias, padding=1):
    """x_nchw: (N, Cin, H, W); weight: (Cout, Cin) or (Cout, Cin, 1, 1); bias: (Cout,)."""
    N, Cin, H, W = x_nchw.shape
    if weight.ndim == 4:                       # PyTorch Conv2d layout (Cout, Cin, 1, 1)
        weight = weight[:, :, 0, 0]
    Cout = weight.shape[0]

    # Zero-pad the input: a 1x1 conv with padding == pointwise conv on the
    # zero-padded input (border pixels -> hardswish(bias) automatically).
    xp = jnp.pad(x_nchw, ((0, 0), (0, 0), (padding, padding), (padding, padding)))
    Hp, Wp = H + 2 * padding, W + 2 * padding
    HW = Hp * Wp
    xp_flat = xp.reshape(N, Cin, HW).astype(jnp.float32)   # pixels-last, free reshape

    T = _pick_pixel_tile(HW, N)
    grid = (N, pl.cdiv(HW, T))

    out_flat = pl.pallas_call(
        _conv1x1_hardswish_kernel,
        out_shape=jax.ShapeDtypeStruct((N, Cout, HW), jnp.float32),
        grid=grid,
        in_specs=[
            pl.BlockSpec((Cout, Cin), lambda n, t: (0, 0)),              # weight
            pl.BlockSpec((Cout, 1), lambda n, t: (0, 0)),                # bias
            pl.BlockSpec((pl.Squeezed(), Cin, T), lambda n, t: (n, 0, t)),
        ],
        out_specs=pl.BlockSpec((pl.Squeezed(), Cout, T), lambda n, t: (n, 0, t)),
        compiler_params=pltpu.CompilerParams(
            dimension_semantics=("parallel", "parallel"),
            vmem_limit_bytes=32 * 1024 * 1024,
        ),
    )(weight.astype(jnp.float32), bias.reshape(Cout, 1).astype(jnp.float32), xp_flat)

    return out_flat.reshape(N, Cout, Hp, Wp)


def _reference(x_nchw, weight, bias, padding=1):
    """Pure-JAX reference (1x1 conv with zero padding + hardswish)."""
    xp = jnp.pad(x_nchw, ((0, 0), (0, 0), (padding, padding), (padding, padding)))
    v1 = jnp.einsum("nchw,oc->nohw", xp, weight) + bias[None, :, None, None]
    v4 = jnp.clip(v1 + 3.0, 0.0, 6.0)
    return v1 * v4 / 6.0


if __name__ == "__main__":
    key = jax.random.PRNGKey(0)
    kx, kw, kb = jax.random.split(key, 3)

    # Shapes implied by the module: Conv2d(3 -> 8, kernel=1, stride=1, padding=1).
    N, Cin, H, W, Cout = 1, 3, 64, 64, 8
    x = jax.random.normal(kx, (N, Cin, H, W), dtype=jnp.float32)
    weight = 0.1 * jax.random.normal(kw, (Cout, Cin), dtype=jnp.float32)
    bias = 0.1 * jax.random.normal(kb, (Cout,), dtype=jnp.float32)

    out = conv1x1_hardswish(x, weight, bias)
    jax.block_until_ready(out)
    assert out.shape == (N, Cout, H + 2, W + 2)
    assert jnp.allclose(out, _reference(x, weight, bias), atol=1e-5, rtol=1e-5)

    # Second small case: exercises the batch grid axis and a masked tail tile.
    x2 = jax.random.normal(kx, (2, Cin, 16, 16), dtype=jnp.float32)
    out2 = conv1x1_hardswish(x2, weight, bias)
    jax.block_until_ready(out2)
    assert jnp.allclose(out2, _reference(x2, weight, bias), atol=1e-5, rtol=1e-5)

    print("KERNEL_OK")
</pallas_src>

<mosaic_0001>
module attributes {stable_mosaic.version = 11 : i64} {
  func.func @_conv1x1_hardswish_kernel(%arg0: i32, %arg1: i32, %arg2: memref<8x3xf32, #tpu.memory_space<vmem>>, %arg3: memref<8x1xf32, #tpu.memory_space<vmem>>, %arg4: memref<1x3x2304xf32, #tpu.memory_space<vmem>>, %arg5: memref<1x8x2304xf32, #tpu.memory_space<vmem>>) attributes {dimension_semantics = [#tpu.dimension_semantics<parallel>, #tpu.dimension_semantics<parallel>], iteration_bounds = array<i64: 1, 2>, scalar_prefetch = 0 : i64, scratch_operands = 0 : i64, tpu.core_type = #tpu.core_type<tc>, window_params = [{pipeline_mode = #tpu.pipeline_mode<synchronous>, transform_indices = @transform_0, window_bounds = array<i64: 8, 3>}, {pipeline_mode = #tpu.pipeline_mode<synchronous>, transform_indices = @transform_1, window_bounds = array<i64: 8, 1>}, {transform_indices = @transform_2, window_bounds = array<i64: 1, 3, 2304>}, {transform_indices = @transform_3, window_bounds = array<i64: 1, 8, 2304>}]} {
    %c0 = arith.constant 0 : index
    %c0_0 = arith.constant 0 : index
    %c0_1 = arith.constant 0 : index
    %0 = vector.load %arg4[%c0, %c0_0, %c0_1] : memref<1x3x2304xf32, #tpu.memory_space<vmem>>, vector<1x3x2304xf32>
    %1 = vector.shape_cast %0 : vector<1x3x2304xf32> to vector<3x2304xf32>
    %c0_2 = arith.constant 0 : index
    %c0_3 = arith.constant 0 : index
    %2 = vector.load %arg2[%c0_2, %c0_3] : memref<8x3xf32, #tpu.memory_space<vmem>>, vector<8x3xf32>
    %c0_4 = arith.constant 0 : index
    %c0_5 = arith.constant 0 : index
    %3 = vector.load %arg3[%c0_4, %c0_5] : memref<8x1xf32, #tpu.memory_space<vmem>>, vector<8x1xf32>
    %4 = vector.extract_strided_slice %2 {offsets = [0, 0], sizes = [8, 1], strides = [1, 1]} : vector<8x3xf32> to vector<8x1xf32>
    %5 = vector.extract_strided_slice %1 {offsets = [0, 0], sizes = [1, 2304], strides = [1, 1]} : vector<3x2304xf32> to vector<1x2304xf32>
    %6 = vector.broadcast %4 : vector<8x1xf32> to vector<8x2304xf32>
    %7 = vector.broadcast %5 : vector<1x2304xf32> to vector<8x2304xf32>
    %8 = arith.mulf %6, %7 : vector<8x2304xf32>
    %9 = vector.broadcast %3 : vector<8x1xf32> to vector<8x2304xf32>
    %10 = arith.addf %9, %8 : vector<8x2304xf32>
    %11 = vector.extract_strided_slice %2 {offsets = [0, 1], sizes = [8, 1], strides = [1, 1]} : vector<8x3xf32> to vector<8x1xf32>
    %12 = vector.extract_strided_slice %1 {offsets = [1, 0], sizes = [1, 2304], strides = [1, 1]} : vector<3x2304xf32> to vector<1x2304xf32>
    %13 = vector.broadcast %11 : vector<8x1xf32> to vector<8x2304xf32>
    %14 = vector.broadcast %12 : vector<1x2304xf32> to vector<8x2304xf32>
    %15 = arith.mulf %13, %14 : vector<8x2304xf32>
    %16 = arith.addf %10, %15 : vector<8x2304xf32>
    %17 = vector.extract_strided_slice %2 {offsets = [0, 2], sizes = [8, 1], strides = [1, 1]} : vector<8x3xf32> to vector<8x1xf32>
    %18 = vector.extract_strided_slice %1 {offsets = [2, 0], sizes = [1, 2304], strides = [1, 1]} : vector<3x2304xf32> to vector<1x2304xf32>
    %19 = vector.broadcast %17 : vector<8x1xf32> to vector<8x2304xf32>
    %20 = vector.broadcast %18 : vector<1x2304xf32> to vector<8x2304xf32>
    %21 = arith.mulf %19, %20 : vector<8x2304xf32>
    %22 = arith.addf %16, %21 : vector<8x2304xf32>
    %cst = arith.constant 3.000000e+00 : f32
    %23 = vector.broadcast %cst : f32 to vector<8x2304xf32>
    %24 = arith.addf %22, %23 : vector<8x2304xf32>
    %cst_6 = arith.constant 0.000000e+00 : f32
    %cst_7 = arith.constant 6.000000e+00 : f32
    %25 = vector.broadcast %cst_6 : f32 to vector<8x2304xf32>
    %26 = arith.maximumf %25, %24 : vector<8x2304xf32>
    %27 = vector.broadcast %cst_7 : f32 to vector<8x2304xf32>
    %28 = arith.minimumf %27, %26 : vector<8x2304xf32>
    %cst_8 = arith.constant 0.166666672 : f32
    %29 = vector.broadcast %cst_8 : f32 to vector<8x2304xf32>
    %30 = arith.mulf %28, %29 : vector<8x2304xf32>
    %31 = arith.mulf %22, %30 : vector<8x2304xf32>
    %c0_9 = arith.constant 0 : index
    %c0_10 = arith.constant 0 : index
    %c0_11 = arith.constant 0 : index
    %32 = vector.load %arg5[%c0_9, %c0_10, %c0_11] : memref<1x8x2304xf32, #tpu.memory_space<vmem>>, vector<1x8x2304xf32>
    %33 = vector.shape_cast %32 : vector<1x8x2304xf32> to vector<8x2304xf32>
    %34 = vector.shape_cast %31 : vector<8x2304xf32> to vector<1x8x2304xf32>
    tpu.vector_store %arg5[%c0_9, %c0_10, %c0_11], %34 {strides = array<i32>} : memref<1x8x2304xf32, #tpu.memory_space<vmem>>, vector<1x8x2304xf32>,
    return
  }
  func.func @transform_0(%arg0: i32, %arg1: i32) -> (i32, i32) {
    %c0_i32 = arith.constant 0 : i32
    %c0_i32_0 = arith.constant 0 : i32
    %c0_i32_1 = arith.constant 0 : i32
    return %c0_i32, %c0_i32_0 : i32, i32
  }
  func.func @transform_1(%arg0: i32, %arg1: i32) -> (i32, i32) {
    %c0_i32 = arith.constant 0 : i32
    %c0_i32_0 = arith.constant 0 : i32
    %c0_i32_1 = arith.constant 0 : i32
    return %c0_i32, %c0_i32_0 : i32, i32
  }
  func.func @transform_2(%arg0: i32, %arg1: i32) -> (i32, i32, i32) {
    %c0_i32 = arith.constant 0 : i32
    %c0_i32_0 = arith.constant 0 : i32
    return %arg0, %c0_i32, %arg1 : i32, i32, i32
  }
  func.func @transform_3(%arg0: i32, %arg1: i32) -> (i32, i32, i32) {
    %c0_i32 = arith.constant 0 : i32
    %c0_i32_0 = arith.constant 0 : i32
    return %arg0, %c0_i32, %arg1 : i32, i32, i32
  }
}

</mosaic_0001>

<bundles_post_ra>
// kernel: tpu_custom_call.1
= control target key start
LH: loop header
LB: loop body
LE: loop exit
PB: predicated region body
PF: predicated region fallthrough
CT: control target
= control target key end

     0   :  { %8 = vsyncpa [#allocation3], 0  ;;  %s1774_s0 = inlined_call_operand.vmem [shape: f32[8,3], index: 0, kind: input, shape index: {}]   ;;  %s1775_s1 = inlined_call_operand.vmem [shape: f32[8,1], index: 1, kind: input, shape index: {}]   ;;  %s1776_s2 = inlined_call_operand.vmem [shape: f32[1,3,4356], index: 2, kind: input, shape index: {}]   ;;  %s1777_s3 = inlined_call_operand.hbm [shape: f32[1,8,4356], index: 3, kind: output, shape index: {}]  }
   0x1   :  { %10 = vsyncpa [#allocation3 + $0x1], 0  ;;  %s1241_s12 = smov 0   ;;  %s1243_s13 = smov 0  }
   0x2   :  { %s1245_s14 = smov 0   ;;  %s1247_s15 = smov 0  }
   0x3   :  { %s1249_s16 = smov 0   ;;  %s1251_s17 = smov 0  }
   0x4 LB: > { %s1063_s18 = sadd.s32 4294967295, %s1215_s17   ;;  %s1064_s19 = sadd.s32 4294967294, %s1215_s17   ;;  %s1215_s17 = sphi %s1251_s17, %s16_s17   ;;  %s1211_s16 = sphi %s1249_s16, %s1808_s16   ;;  %s1207_s15 = sphi %s1247_s15, %s1807_s15   ;;  %s1203_s14 = sphi %s1245_s14, %s1806_s14   ;;  %s1199_s13 = sphi %s1243_s13, %s1805_s13   ;;  %s1195_s12 = sphi %s1241_s12, %s1804_s12  }
   0x5   : > { %s25_s20 = sadd.s32 1, %s1211_s16  ;;  %s107_s21 = sadd.s32 1, %s1203_s14 }
   0x6   : > { %p26_p0 = scmp.ge.s32.totalorder %s25_s20, 2  ;;  %p117_p1 = scmp.ne.s32.totalorder %s1203_s14, %s1199_s13 }
   0x7   : > { %p118_p2 = scmp.eq.s32.totalorder %s1063_s18, 1  ;;  %p123_p3 = scmp.ne.s32.totalorder %s1199_s13, %s1195_s12 }
   0x8   : > { %s1810_s20 = smov (%p26_p0, %s25_s20), 0  ;;  %p124_p5 = scmp.eq.s32.totalorder %s1064_s19, 1 }
   0x9   : > { %p1281_p4 = por %p118_p2, %p117_p1  ;;  %s103_s23 = ssub.s32 %s1211_s16, %s1810_s20 }
   0xa   : > { %p1067_p6 = scmp.ge.s32.totalorder %s1215_s17, 1  ;;  %p105_p7 = scmp.eq.s32.totalorder %s103_s23, 0 }
   0xb   : > { %p1288_p8 = por %p124_p5, %p123_p3  ;;  %p169_p9 = scmp.lt.s32.totalorder %s1215_s17, 3 }
   0xc   : > { %s1294_s25 = scalar_select %p105_p7, %s1203_s14, %s107_s21  }
   0xd   : > { %p170_p10 = pnand %p1067_p6, %p169_p9 }
   0xf   : > { %173 = sbr.rel (%p170_p10) target bundleno = 228 (0xe4), region = 32 }
  0x14   : > { %v233_v0 = vld [vmem:[%s1774_s0] sm:$0xff]  ;;  %v1217_v1 = vmov 0   ;;  %v1218_v2 = vmov 1   ;;  %v1219_v4 = vmov 2   ;;  %s198_s30 = sand.u32 1, %s1199_s13   ;;  %s1304_s4 = smul.u32 18, %s1207_s15  ;;  %v249_v5 = vlaneseq }
  0x15   : > { %1135 = vset.pattern.permute.xlu0 %v1217_v1  ;;  %1136 = vset.pattern.permute.xlu1 %v1218_v2  ;;  %v234_v3 = vld [vmem:[%s1775_s1] sm:$0xff]  ;;  %s1678_s10 = smul.u32 144, %s198_s30  ;;  %s1721_s18 = scalar_lea.sflag [#allocation3], %s198_s30 }
  0x16   : > { %237 = vperm.xlu0 %1135, %v233_v0   ;;  %453 = vperm.xlu1 %1136, %v233_v0   ;;  %p208_p11 = scmp.lt.s32.totalorder %s1304_s4, 34  ;;  %v1308_v6 = vshrl.u32 %v249_v5, 7  ;;  %s973_s19 = ssub.s32 (%p1281_p4), 35, %s1304_s4 }
  0x17   : > { %s1684_s11 = scalar_lea.vmem [#allocation2], %s1678_s10  ;;  %p974_p12 = scmp.lt.s32.totalorder (%p1281_p4), %s973_s19, 18 }
  0x18   : > { %s209_s5 = scalar_select %p208_p11, %s1304_s4, 34  ;;  %v251_v7 = vsub.s32 0, %v1308_v6  ;;  %v255_v8 = vsub.s32 4, %v1308_v6  ;;  %v1322_v12 = vsub.s32 1, %v1308_v6  ;;  %v1329_v15 = vsub.s32 5, %v1308_v6 }
  0x19   : > { %v1332_v16 = vsub.s32 2, %v1308_v6 }
  0x1a   : > { %431 = vperm.xlu0 %1135, %v234_v3   ;;  %1137 = vset.pattern.permute.xlu1 %v1219_v4  ;;  %s1068_s6 = sshll.u32 %s209_s5, 2 }
  0x1b   : > { %655 = vperm.xlu1 %1137, %v233_v0   ;;  %s213_s9 = scalar_lea.vmem %s1776_s2, %s1068_s6 }
  0x1c   : > { %v1315_v9 = vld [vmem:[%s213_s9] sm:$0x77]  ;;  %v1317_v10 = vld [vmem:[%s213_s9 + $0x8] sm:$0x77]  ;;  %v1319_v11 = vld [vmem:[%s213_s9 + $0x10] sm:$0x77] }
  0x1d   : > { %v1324_v13 = vld [vmem:[%s213_s9 + $0x18] sm:$0x77]  ;;  %v1326_v14 = vld [vmem:[%s213_s9 + $0x20] sm:$0x77]  ;;  %v1334_v17 = vld [vmem:[%s213_s9 + $0x28] sm:$0x77]  ;;  %v252_v19 = vrot.slane %v1315_v9, %v251_v7  ;;  %v256_v22 = vrot.slane %v1315_v9, %v255_v8  ;;  %v260_v23 = vrot.slane %v1317_v10, %v251_v7  ;;  %v264_v24 = vrot.slane %v1317_v10, %v255_v8 }
  0x1e   : > { %1138 = vset.pattern.permute.xlu0 %v1219_v4  ;;  %v1336_v18 = vld [vmem:[%s213_s9 + $0x30] sm:$0x77]  ;;  %v1339_v20 = vld [vmem:[%s213_s9 + $0x38] sm:$0x77]  ;;  %v1341_v21 = vld [vmem:[%s213_s9 + $0x40] sm:$0x77]  ;;  %v268_v25 = vrot.slane %v1319_v11, %v251_v7  ;;  %v272_v26 = vrot.slane %v1319_v11, %v255_v8  ;;  %v276_v27 = vrot.slane %v1324_v13, %v251_v7  ;;  %v280_v28 = vrot.slane %v1324_v13, %v255_v8 }
  0x1f   : > { %v284_v29 = vrot.slane %v1326_v14, %v251_v7  ;;  %v288_v30 = vrot.slane %v1326_v14, %v255_v8  ;;  %v292_v31 = vrot.slane %v1334_v17, %v251_v7  ;;  %v296_v32 = vrot.slane %v1334_v17, %v255_v8 }
  0x20   : > { %v300_v33 = vrot.slane %v1336_v18, %v251_v7  ;;  %v304_v34 = vrot.slane %v1336_v18, %v255_v8  ;;  %v308_v35 = vrot.slane %v1339_v20, %v251_v7  ;;  %v312_v36 = vrot.slane %v1339_v20, %v255_v8 }
  0x21   : > { %v316_v37 = vrot.slane %v1341_v21, %v251_v7  ;;  %v320_v38 = vrot.slane %v1341_v21, %v255_v8  ;;  %v1360_v39 = vrot.slane %v252_v19, %v251_v7  ;;  %v1362_v40 = vrot.slane %v256_v22, %v251_v7 }
  0x22   : > { %v1364_v41 = vrot.slane %v260_v23, %v251_v7  ;;  %v1366_v42 = vrot.slane %v264_v24, %v251_v7  ;;  %v1368_v43 = vrot.slane %v268_v25, %v251_v7  ;;  %v1370_v44 = vrot.slane %v272_v26, %v251_v7 }
  0x23   : > { %v1372_v45 = vrot.slane %v276_v27, %v251_v7  ;;  %v1374_v46 = vrot.slane %v280_v28, %v251_v7  ;;  %v1376_v47 = vrot.slane %v284_v29, %v251_v7  ;;  %v1378_v48 = vrot.slane %v288_v30, %v251_v7 }
  0x24   : > { %v1380_v49 = vrot.slane %v292_v31, %v251_v7  ;;  %v1382_v50 = vrot.slane %v296_v32, %v251_v7  ;;  %v1384_v51 = vrot.slane %v300_v33, %v251_v7  ;;  %v1386_v52 = vrot.slane %v304_v34, %v251_v7 }
  0x25   : > { %v1388_v53 = vrot.slane %v308_v35, %v251_v7  ;;  %v1390_v54 = vrot.slane %v312_v36, %v251_v7  ;;  %v1392_v55 = vrot.slane %v316_v37, %v251_v7  ;;  %v1394_v56 = vrot.slane %v320_v38, %v251_v7 }
  0x26   : > { %v459_v57 = vrot.slane %v1315_v9, %v1322_v12  ;;  %v463_v58 = vrot.slane %v1315_v9, %v1329_v15  ;;  %v467_v59 = vrot.slane %v1317_v10, %v1322_v12  ;;  %v471_v60 = vrot.slane %v1317_v10, %v1329_v15 }
  0x27   : > { %v475_v61 = vrot.slane %v1319_v11, %v1322_v12  ;;  %v479_v62 = vrot.slane %v1319_v11, %v1329_v15  ;;  %v483_v63 = vrot.slane %v1324_v13, %v1322_v12  ;;  %v487_v0 = vrot.slane %v1324_v13, %v1329_v15 }
  0x28   : > { %v491_v1 = vrot.slane %v1326_v14, %v1322_v12  ;;  %v495_v2 = vrot.slane %v1326_v14, %v1329_v15  ;;  %v499_v3 = vrot.slane %v1334_v17, %v1322_v12  ;;  %v503_v4 = vrot.slane %v1334_v17, %v1329_v15 }
  0x29   : > { %v507_v5 = vrot.slane %v1336_v18, %v1322_v12  ;;  %v511_v7 = vrot.slane %v1336_v18, %v1329_v15  ;;  %v515_v8 = vrot.slane %v1339_v20, %v1322_v12  ;;  %v519_v19 = vrot.slane %v1339_v20, %v1329_v15 }
  0x2a   : > { %v523_v22 = vrot.slane %v1341_v21, %v1322_v12  ;;  %v527_v23 = vrot.slane %v1341_v21, %v1329_v15  ;;  %v1433_v24 = vrot.slane %v459_v57, %v1322_v12  ;;  %v1436_v25 = vrot.slane %v463_v58, %v1322_v12 }
  0x2b   : > { %v1439_v26 = vrot.slane %v467_v59, %v1322_v12  ;;  %v1442_v27 = vrot.slane %v471_v60, %v1322_v12  ;;  %v1445_v28 = vrot.slane %v475_v61, %v1322_v12  ;;  %v1448_v29 = vrot.slane %v479_v62, %v1322_v12 }
  0x2c   : > { %v664_v15 = vsub.s32 6, %v1308_v6  ;;  %v1452_v30 = vrot.slane %v483_v63, %v1322_v12  ;;  %v1455_v31 = vrot.slane %v487_v0, %v1322_v12  ;;  %v1458_v32 = vrot.slane %v491_v1, %v1322_v12 }
  0x2d   : > { %v1461_v33 = vrot.slane %v495_v2, %v1322_v12  ;;  %v1464_v34 = vrot.slane %v499_v3, %v1322_v12  ;;  %v1467_v35 = vrot.slane %v503_v4, %v1322_v12  ;;  %v1470_v6 = vrot.slane %v507_v5, %v1322_v12 }
  0x2e   : > { %v1473_v36 = vrot.slane %v511_v7, %v1322_v12  ;;  %v1476_v37 = vrot.slane %v515_v8, %v1322_v12  ;;  %v1479_v38 = vrot.slane %v519_v19, %v1322_v12  ;;  %v1482_v57 = vrot.slane %v523_v22, %v1322_v12 }
  0x2f   : > { %v1485_v58 = vrot.slane %v527_v23, %v1322_v12  ;;  %v661_v59 = vrot.slane %v1315_v9, %v1332_v16  ;;  %v665_v60 = vrot.slane %v1315_v9, %v664_v15  ;;  %v669_v61 = vrot.slane %v1317_v10, %v1332_v16 }
  0x30   : > { %v677_v62 = vrot.slane %v1319_v11, %v1332_v16  ;;  %v673_v63 = vrot.slane %v1317_v10, %v664_v15  ;;  %v681_v0 = vrot.slane %v1319_v11, %v664_v15  ;;  %v685_v1 = vrot.slane %v1324_v13, %v1332_v16 }
  0x31   : > { %v693_v12 = vrot.slane %v1326_v14, %v1332_v16  ;;  %v689_v2 = vrot.slane %v1324_v13, %v664_v15  ;;  %v697_v9 = vrot.slane %v1326_v14, %v664_v15  ;;  %v701_v3 = vrot.slane %v1334_v17, %v1332_v16 }
  0x32   : > { %v709_v4 = vrot.slane %v1336_v18, %v1332_v16  ;;  %v705_v10 = vrot.slane %v1334_v17, %v664_v15  ;;  %v713_v11 = vrot.slane %v1336_v18, %v664_v15  ;;  %v717_v5 = vrot.slane %v1339_v20, %v1332_v16 }
  0x33   : > { %v721_v7 = vrot.slane %v1339_v20, %v664_v15  ;;  %v725_v13 = vrot.slane %v1341_v21, %v1332_v16  ;;  %v729_v14 = vrot.slane %v1341_v21, %v664_v15  ;;  %v1515_v8 = vrot.slane %v661_v59, %v1332_v16 }
  0x34   : > { %v1518_v19 = vrot.slane %v665_v60, %v1332_v16  ;;  %v1521_v17 = vrot.slane %v669_v61, %v1332_v16  ;;  %v1524_v18 = vrot.slane %v673_v63, %v1332_v16  ;;  %v1527_v22 = vrot.slane %v677_v62, %v1332_v16 }
  0x35   : > { %v1530_v20 = vrot.slane %v681_v0, %v1332_v16  ;;  %v1533_v21 = vrot.slane %v685_v1, %v1332_v16  ;;  %v1536_v23 = vrot.slane %v689_v2, %v1332_v16  ;;  %v1539_v15 = vrot.slane %v693_v12, %v1332_v16 }
  0x36   : > { %v1542_v59 = vrot.slane %v697_v9, %v1332_v16  ;;  %v1545_v60 = vrot.slane %v701_v3, %v1332_v16  ;;  %v1548_v61 = vrot.slane %v705_v10, %v1332_v16  ;;  %v1551_v62 = vrot.slane %v709_v4, %v1332_v16 }
  0x37   : > { %1780 = vst [vmem:[#allocation5_spill] sm:$0xff] %v1533_v21  ;;  %1781 = vst [vmem:[#allocation6_spill] sm:$0xff] %v1536_v23  ;;  %v1554_v63 = vrot.slane %v713_v11, %v1332_v16  ;;  %v1557_v1 = vrot.slane %v717_v5, %v1332_v16  ;;  %v1560_v12 = vrot.slane %v721_v7, %v1332_v16 }
  0x38   : > { %1782 = vst [vmem:[#allocation7_spill] sm:$0xff] %v1539_v15  ;;  %1783 = vst [vmem:[#allocation8_spill] sm:$0xff] %v1542_v59  ;;  %v1563_v2 = vrot.slane %v725_v13, %v1332_v16  ;;  %v1566_v9 = vrot.slane %v729_v14, %v1332_v16 }
  0x39   : > { %1784 = vst [vmem:[#allocation9_spill] sm:$0xff] %v1545_v60  ;;  %1785 = vst [vmem:[#allocation10_spill] sm:$0xff] %v1548_v61 }
  0x3a   : > { %1786 = vst [vmem:[#allocation11_spill] sm:$0xff] %v1551_v62  ;;  %1787 = vst [vmem:[#allocation12_spill] sm:$0xff] %v1554_v63 }
  0x3b   : > { %1788 = vst [vmem:[#allocation13_spill] sm:$0xff] %v1557_v1  ;;  %1789 = vst [vmem:[#allocation14_spill] sm:$0xff] %v1560_v12 }
  0x3c   : > { %1790 = vst [vmem:[#allocation15_spill] sm:$0xff] %v1563_v2  ;;  %1791 = vst [vmem:[#allocation16_spill] sm:$0xff] %v1566_v9 }
  0x91   : > { %v238_v0 = vpop.permute.xlu0 %237 }
  0x92   : > { %v411_v3 = vmul.f32 %v1360_v39, %v238_v0  ;;  %v412_v4 = vmul.f32 %v1362_v40, %v238_v0  ;;  %v413_v10 = vmul.f32 %v1364_v41, %v238_v0  ;;  %v414_v11 = vmul.f32 %v1366_v42, %v238_v0 }
  0x93   : > { %v415_v5 = vmul.f32 %v1368_v43, %v238_v0  ;;  %v416_v1 = vmul.f32 %v1370_v44, %v238_v0  ;;  %v417_v7 = vmul.f32 %v1372_v45, %v238_v0  ;;  %v418_v13 = vmul.f32 %v1374_v46, %v238_v0 }
  0x94   : > { %v419_v2 = vmul.f32 %v1376_v47, %v238_v0  ;;  %v420_v16 = vmul.f32 %v1378_v48, %v238_v0  ;;  %v421_v39 = vmul.f32 %v1380_v49, %v238_v0  ;;  %v422_v40 = vmul.f32 %v1382_v50, %v238_v0  ;;  %v454_v50 = vpop.permute.xlu1 %453 }
  0x95   : > { %v432_v14 = vpop.permute.xlu0 %431  ;;  %v423_v41 = vmul.f32 %v1384_v51, %v238_v0  ;;  %v424_v42 = vmul.f32 %v1386_v52, %v238_v0  ;;  %v425_v43 = vmul.f32 %v1388_v53, %v238_v0  ;;  %v426_v44 = vmul.f32 %v1390_v54, %v238_v0 }
  0x96   : > { %v427_v45 = vmul.f32 %v1392_v55, %v238_v0  ;;  %v428_v46 = vmul.f32 %v1394_v56, %v238_v0  ;;  %v434_v47 = vadd.f32 %v432_v14, %v411_v3  ;;  %v435_v9 = vadd.f32 %v432_v14, %v412_v4 }
  0x97   : > { %v436_v48 = vadd.f32 %v432_v14, %v413_v10  ;;  %v437_v12 = vadd.f32 %v432_v14, %v414_v11  ;;  %v438_v49 = vadd.f32 %v432_v14, %v415_v5  ;;  %v439_v63 = vadd.f32 %v432_v14, %v416_v1 }
  0x98   : > { %v440_v62 = vadd.f32 %v432_v14, %v417_v7  ;;  %v441_v61 = vadd.f32 %v432_v14, %v418_v13  ;;  %v442_v51 = vadd.f32 %v432_v14, %v419_v2  ;;  %v443_v60 = vadd.f32 %v432_v14, %v420_v16 }
  0x99   : > { %v444_v52 = vadd.f32 %v432_v14, %v421_v39  ;;  %v445_v59 = vadd.f32 %v432_v14, %v422_v40  ;;  %v446_v53 = vadd.f32 %v432_v14, %v423_v41  ;;  %v447_v15 = vadd.f32 %v432_v14, %v424_v42  ;;  %v656_v41 = vpop.permute.xlu1 %655 }
  0x9a   : > { %v448_v54 = vadd.f32 %v432_v14, %v425_v43  ;;  %v449_v23 = vadd.f32 %v432_v14, %v426_v44  ;;  %v450_v55 = vadd.f32 %v432_v14, %v427_v45  ;;  %v451_v21 = vadd.f32 %v432_v14, %v428_v46  ;;  %v1793_v46 = vld [vmem:[#allocation6_spill] sm:$0xff] }
  0x9b   : > { %v618_v56 = vmul.f32 %v1433_v24, %v454_v50  ;;  %v619_v0 = vmul.f32 %v1436_v25, %v454_v50  ;;  %v620_v3 = vmul.f32 %v1439_v26, %v454_v50  ;;  %v621_v1 = vmul.f32 %v1442_v27, %v454_v50 }
  0x9c   : > { %v622_v4 = vmul.f32 %v1445_v28, %v454_v50  ;;  %v623_v2 = vmul.f32 %v1448_v29, %v454_v50  ;;  %v624_v10 = vmul.f32 %v1452_v30, %v454_v50  ;;  %v625_v11 = vmul.f32 %v1455_v31, %v454_v50 }
  0x9d   : > { %v626_v5 = vmul.f32 %v1458_v32, %v454_v50  ;;  %v627_v7 = vmul.f32 %v1461_v33, %v454_v50  ;;  %v628_v24 = vmul.f32 %v1464_v34, %v454_v50  ;;  %v629_v25 = vmul.f32 %v1467_v35, %v454_v50 }
  0x9e   : > { %v630_v26 = vmul.f32 %v1470_v6, %v454_v50  ;;  %v631_v27 = vmul.f32 %v1473_v36, %v454_v50  ;;  %v632_v28 = vmul.f32 %v1476_v37, %v454_v50  ;;  %v633_v29 = vmul.f32 %v1479_v38, %v454_v50 }
  0x9f   : > { %v634_v30 = vmul.f32 %v1482_v57, %v454_v50  ;;  %v635_v31 = vmul.f32 %v1485_v58, %v454_v50  ;;  %v636_v13 = vadd.f32 %v618_v56, %v434_v47  ;;  %v637_v32 = vadd.f32 %v619_v0, %v435_v9  ;;  %v1794_v47 = vld [vmem:[#allocation7_spill] sm:$0xff]  ;;  %v1797_v50 = vld [vmem:[#allocation10_spill] sm:$0xff]  ;;  %v1803_v0 = vld [vmem:[#allocation16_spill] sm:$0xff] }
  0xa0   : > { %v638_v16 = vadd.f32 %v620_v3, %v436_v48  ;;  %v639_v33 = vadd.f32 %v621_v1, %v437_v12  ;;  %v640_v39 = vadd.f32 %v622_v4, %v438_v49  ;;  %v641_v34 = vadd.f32 %v623_v2, %v439_v63  ;;  %v1792_v63 = vld [vmem:[#allocation5_spill] sm:$0xff]  ;;  %v1795_v48 = vld [vmem:[#allocation8_spill] sm:$0xff] }
  0xa1   : > { %v642_v40 = vadd.f32 %v624_v10, %v440_v62  ;;  %v643_v35 = vadd.f32 %v625_v11, %v441_v61  ;;  %v644_v14 = vadd.f32 %v626_v5, %v442_v51  ;;  %v645_v6 = vadd.f32 %v627_v7, %v443_v60  ;;  %v1796_v49 = vld [vmem:[#allocation9_spill] sm:$0xff]  ;;  %v1798_v51 = vld [vmem:[#allocation11_spill] sm:$0xff] }
  0xa2   : > { %v646_v36 = vadd.f32 %v628_v24, %v444_v52  ;;  %v647_v42 = vadd.f32 %v629_v25, %v445_v59  ;;  %v648_v37 = vadd.f32 %v630_v26, %v446_v53  ;;  %v649_v43 = vadd.f32 %v631_v27, %v447_v15  ;;  %v1799_v52 = vld [vmem:[#allocation12_spill] sm:$0xff]  ;;  %v1800_v53 = vld [vmem:[#allocation13_spill] sm:$0xff] }
  0xa3   : > { %v650_v38 = vadd.f32 %v632_v28, %v448_v54  ;;  %v651_v44 = vadd.f32 %v633_v29, %v449_v23  ;;  %v652_v57 = vadd.f32 %v634_v30, %v450_v55  ;;  %v653_v45 = vadd.f32 %v635_v31, %v451_v21  ;;  %v1801_v54 = vld [vmem:[#allocation14_spill] sm:$0xff]  ;;  %v1802_v55 = vld [vmem:[#allocation15_spill] sm:$0xff] }
  0xa4   : > { %v820_v58 = vmul.f32 %v1515_v8, %v656_v41  ;;  %v821_v9 = vmul.f32 %v1518_v19, %v656_v41  ;;  %v822_v12 = vmul.f32 %v1521_v17, %v656_v41  ;;  %v823_v62 = vmul.f32 %v1524_v18, %v656_v41 }
  0xa5   : > { %v824_v61 = vmul.f32 %v1527_v22, %v656_v41  ;;  %v825_v60 = vmul.f32 %v1530_v20, %v656_v41  ;;  %v826_v59 = vmul.f32 %v1792_v63, %v656_v41  ;;  %v827_v15 = vmul.f32 %v1793_v46, %v656_v41 }
  0xa6   : > { %v828_v23 = vmul.f32 %v1794_v47, %v656_v41  ;;  %v829_v21 = vmul.f32 %v1795_v48, %v656_v41  ;;  %v830_v8 = vmul.f32 %v1796_v49, %v656_v41  ;;  %v831_v19 = vmul.f32 %v1797_v50, %v656_v41 }
  0xa7   : > { %v832_v17 = vmul.f32 %v1798_v51, %v656_v41  ;;  %v833_v18 = vmul.f32 %v1799_v52, %v656_v41  ;;  %v834_v22 = vmul.f32 %v1800_v53, %v656_v41  ;;  %v835_v20 = vmul.f32 %v1801_v54, %v656_v41 }
  0xa8   : > { %v836_v56 = vmul.f32 %v1802_v55, %v656_v41  ;;  %v837_v3 = vmul.f32 %v1803_v0, %v656_v41  ;;  %v1622_v1 = vadd.f32 %v820_v58, %v636_v13  ;;  %v1624_v4 = vadd.f32 %v821_v9, %v637_v32 }
  0xa9   : > { %v1626_v2 = vadd.f32 %v822_v12, %v638_v16  ;;  %v1628_v10 = vadd.f32 %v823_v62, %v639_v33  ;;  %v1630_v11 = vadd.f32 %v824_v61, %v640_v39  ;;  %v1632_v5 = vadd.f32 %v825_v60, %v641_v34 }
  0xaa   : > { %v1634_v7 = vadd.f32 %v826_v59, %v642_v40  ;;  %v1636_v24 = vadd.f32 %v827_v15, %v643_v35  ;;  %v1638_v25 = vadd.f32 %v828_v23, %v644_v14  ;;  %v1640_v26 = vadd.f32 %v829_v21, %v645_v6 }
  0xab   : > { %v1642_v27 = vadd.f32 %v830_v8, %v646_v36  ;;  %v1644_v28 = vadd.f32 %v831_v19, %v647_v42  ;;  %v1646_v29 = vadd.f32 %v832_v17, %v648_v37  ;;  %v1648_v30 = vadd.f32 %v833_v18, %v649_v43 }
  0xac   : > { %v1650_v31 = vadd.f32 %v834_v22, %v650_v38  ;;  %v1652_v13 = vadd.f32 %v835_v20, %v651_v44  ;;  %v1654_v32 = vadd.f32 %v836_v56, %v652_v57  ;;  %v1656_v16 = vadd.f32 %v837_v3, %v653_v45 }
  0xad   : > { %v856_v33 = vadd.f32 3.0, %v1622_v1  ;;  %v857_v39 = vadd.f32 3.0, %v1624_v4  ;;  %v858_v34 = vadd.f32 3.0, %v1626_v2  ;;  %v859_v40 = vadd.f32 3.0, %v1628_v10 }
  0xae   : > { %v860_v35 = vadd.f32 3.0, %v1630_v11  ;;  %v861_v14 = vadd.f32 3.0, %v1632_v5  ;;  %v862_v6 = vadd.f32 3.0, %v1634_v7  ;;  %v863_v41 = vadd.f32 3.0, %v1636_v24 }
  0xaf   : > { %v864_v36 = vadd.f32 3.0, %v1638_v25  ;;  %v865_v42 = vadd.f32 3.0, %v1640_v26  ;;  %v866_v37 = vadd.f32 3.0, %v1642_v27  ;;  %v867_v43 = vadd.f32 3.0, %v1644_v28 }
  0xb0   : > { %v868_v38 = vadd.f32 3.0, %v1646_v29  ;;  %v869_v44 = vadd.f32 3.0, %v1648_v30  ;;  %v870_v57 = vadd.f32 3.0, %v1650_v31  ;;  %v871_v45 = vadd.f32 3.0, %v1652_v13 }
  0xb1   : > { %v872_v58 = vadd.f32 3.0, %v1654_v32  ;;  %v873_v9 = vadd.f32 3.0, %v1656_v16  ;;  %v874_v12 = vmax.f32 %v856_v33, 0.0  ;;  %v875_v62 = vmax.f32 %v857_v39, 0.0 }
  0xb2   : > { %v876_v61 = vmax.f32 %v858_v34, 0.0  ;;  %v877_v60 = vmax.f32 %v859_v40, 0.0  ;;  %v878_v63 = vmax.f32 %v860_v35, 0.0  ;;  %v879_v59 = vmax.f32 %v861_v14, 0.0 }
  0xb3   : > { %v880_v46 = vmax.f32 %v862_v6, 0.0  ;;  %v881_v15 = vmax.f32 %v863_v41, 0.0  ;;  %v882_v47 = vmax.f32 %v864_v36, 0.0  ;;  %v883_v23 = vmax.f32 %v865_v42, 0.0 }
  0xb4   : > { %v884_v48 = vmax.f32 %v866_v37, 0.0  ;;  %v885_v21 = vmax.f32 %v867_v43, 0.0  ;;  %v886_v49 = vmax.f32 %v868_v38, 0.0  ;;  %v887_v8 = vmax.f32 %v869_v44, 0.0 }
  0xb5   : > { %v888_v50 = vmax.f32 %v870_v57, 0.0  ;;  %v889_v19 = vmax.f32 %v871_v45, 0.0  ;;  %v890_v51 = vmax.f32 %v872_v58, 0.0  ;;  %v891_v17 = vmax.f32 %v873_v9, 0.0 }
  0xb6   : > { %v892_v52 = vmin.f32 %v874_v12, 6.0  ;;  %v893_v18 = vmin.f32 %v875_v62, 6.0  ;;  %v894_v53 = vmin.f32 %v876_v61, 6.0  ;;  %v895_v22 = vmin.f32 %v877_v60, 6.0 }
  0xb7   : > { %v896_v54 = vmin.f32 %v878_v63, 6.0  ;;  %v897_v20 = vmin.f32 %v879_v59, 6.0  ;;  %v898_v55 = vmin.f32 %v880_v46, 6.0  ;;  %v899_v56 = vmin.f32 %v881_v15, 6.0 }
  0xb8   : > { %v900_v0 = vmin.f32 %v882_v47, 6.0  ;;  %v901_v3 = vmin.f32 %v883_v23, 6.0  ;;  %v902_v33 = vmin.f32 %v884_v48, 6.0  ;;  %v903_v39 = vmin.f32 %v885_v21, 6.0 }
  0xb9   : > { %v904_v34 = vmin.f32 %v886_v49, 6.0  ;;  %v905_v40 = vmin.f32 %v887_v8, 6.0  ;;  %v906_v35 = vmin.f32 %v888_v50, 6.0  ;;  %v907_v14 = vmin.f32 %v889_v19, 6.0 }
  0xba   : > { %v908_v6 = vmin.f32 %v890_v51, 6.0  ;;  %v909_v41 = vmin.f32 %v891_v17, 6.0  ;;  %v910_v36 = vmul.f32 0.16666667, %v892_v52  ;;  %v911_v42 = vmul.f32 0.16666667, %v893_v18 }
  0xbb   : > { %v912_v37 = vmul.f32 0.16666667, %v894_v53  ;;  %v913_v43 = vmul.f32 0.16666667, %v895_v22  ;;  %v914_v38 = vmul.f32 0.16666667, %v896_v54 }
  0xbc   : > { %v915_v44 = vmul.f32 0.16666667, %v897_v20  ;;  %v916_v57 = vmul.f32 0.16666667, %v898_v55  ;;  %v917_v45 = vmul.f32 0.16666667, %v899_v56  ;;  %v928_v58 = vmul.f32 %v910_v36, %v1622_v1 }
  0xbd   : > { %v918_v9 = vmul.f32 0.16666667, %v900_v0  ;;  %v919_v12 = vmul.f32 0.16666667, %v901_v3  ;;  %v920_v62 = vmul.f32 0.16666667, %v902_v33  ;;  %v929_v61 = vmul.f32 %v911_v42, %v1624_v4 }
  0xbe   : > { %v921_v60 = vmul.f32 0.16666667, %v903_v39  ;;  %v922_v63 = vmul.f32 0.16666667, %v904_v34  ;;  %v923_v59 = vmul.f32 0.16666667, %v905_v40  ;;  %v930_v46 = vmul.f32 %v912_v37, %v1626_v2  ;;  %946 = vst [vmem:[%s1684_s11] sm:$0xff] %v928_v58 }
  0xbf   : > { %v924_v15 = vmul.f32 0.16666667, %v906_v35  ;;  %v925_v47 = vmul.f32 0.16666667, %v907_v14  ;;  %v926_v1 = vmul.f32 0.16666667, %v908_v6  ;;  %v931_v23 = vmul.f32 %v913_v43, %v1628_v10 }
  0xc0   : > { %947 = vst [vmem:[%s1684_s11 + $0x8] sm:$0xff] %v929_v61  ;;  %v927_v4 = vmul.f32 0.16666667, %v909_v41  ;;  %v932_v48 = vmul.f32 %v914_v38, %v1630_v11  ;;  %v933_v2 = vmul.f32 %v915_v44, %v1632_v5  ;;  %v934_v21 = vmul.f32 %v916_v57, %v1634_v7  ;;  %948 = vst [vmem:[%s1684_s11 + $0x10] sm:$0xff] %v930_v46 }
  0xc1   : > { %v935_v49 = vmul.f32 %v917_v45, %v1636_v24  ;;  %v936_v8 = vmul.f32 %v918_v9, %v1638_v25  ;;  %v937_v10 = vmul.f32 %v919_v12, %v1640_v26  ;;  %v938_v50 = vmul.f32 %v920_v62, %v1642_v27  ;;  %949 = vst [vmem:[%s1684_s11 + $0x18] sm:$0xff] %v931_v23 }
  0xc2   : > { %v939_v11 = vmul.f32 %v921_v60, %v1644_v28  ;;  %v940_v5 = vmul.f32 %v922_v63, %v1646_v29  ;;  %v941_v7 = vmul.f32 %v923_v59, %v1648_v30  ;;  %v942_v24 = vmul.f32 %v924_v15, %v1650_v31  ;;  %950 = vst [vmem:[%s1684_s11 + $0x20] sm:$0xff] %v932_v48 }
  0xc3   : > { %951 = vst [vmem:[%s1684_s11 + $0x28] sm:$0xff] %v933_v2  ;;  %952 = vst [vmem:[%s1684_s11 + $0x30] sm:$0xff] %v934_v21  ;;  %v943_v25 = vmul.f32 %v925_v47, %v1652_v13  ;;  %v944_v26 = vmul.f32 %v926_v1, %v1654_v32  ;;  %v945_v27 = vmul.f32 %v927_v4, %v1656_v16 }
  0xc4   : > { %953 = vst [vmem:[%s1684_s11 + $0x38] sm:$0xff] %v935_v49  ;;  %954 = vst [vmem:[%s1684_s11 + $0x40] sm:$0xff] %v936_v8 }
  0xc5   : > { %955 = vst [vmem:[%s1684_s11 + $0x48] sm:$0xff] %v937_v10  ;;  %956 = vst [vmem:[%s1684_s11 + $0x50] sm:$0xff] %v938_v50  ;;  %971 = sbr.rel (!%p1281_p4) target bundleno = 228 (0xe4), region = 36 }
  0xc6   : > { %957 = vst [vmem:[%s1684_s11 + $0x58] sm:$0xff] %v939_v11  ;;  %958 = vst [vmem:[%s1684_s11 + $0x60] sm:$0xff] %v940_v5 }
  0xc7   : > { %959 = vst [vmem:[%s1684_s11 + $0x68] sm:$0xff] %v941_v7  ;;  %960 = vst [vmem:[%s1684_s11 + $0x70] sm:$0xff] %v942_v24 }
  0xc8   : > { %961 = vst [vmem:[%s1684_s11 + $0x78] sm:$0xff] %v943_v25  ;;  %962 = vst [vmem:[%s1684_s11 + $0x80] sm:$0xff] %v944_v26 }
  0xc9   : > { %963 = vst [vmem:[%s1684_s11 + $0x88] sm:$0xff] %v945_v27 }
  0xca   : > { %s1812_s19 = smov (!%p974_p12, %s973_s19), 18 }
  0xcb   : > { %s1726_s21 = sshll.u32 %s1812_s19, 7 }
  0xcc   : > { %s978_s23 = ssub.s32 2304, %s1726_s21 }
  0xcd   : > { %979 = vsyncadd %s1721_s18, %s978_s23  ;;  %p1070_p13 = scmp.ne.s32.totalorder %s1726_s21, 0  ;;  %s1076_s26 = smul.u32 2304, %s1207_s15 }
  0xce   : > { %s987_s27 = sshll.u32 %s1684_s11, 4  ;;  %s1220_s4 = smov [#allocation2]   ;;  %s988_s27 = int_to_ptr.vmem [resolvable:$true] %s987_s27 }
  0xcf   : > { %s984_s29 = scalar_lea.hbm %s1777_s3, %s1076_s26  ;;  %s1139_s30 = scalar_lea.vmem %s988_s27, %s1726_s21 }
  0xd0   : > { %p1140_p0 = scmp.ne.s32.totalorder %s988_s27, %s1139_s30  ;;  %s1143_s5 = sshll.u32 %s1220_s4, 4  ;;  %s1144_s5 = int_to_ptr.vmem [resolvable:$false] %s1143_s5 }
  0xd1   : > { %s1145_s6 = scalar_lea.vmem %s1144_s5, 4608  ;;  %p1146_p3 = scmp.lt.s32.totalorder %s988_s27, %s1144_s5 }
  0xd2   : > { %p1141_p1 = pnand %p1140_p0, %p1070_p13  ;;  %p1147_p4 = scmp.lt.s32.totalorder %s1145_s6, %s1139_s30 }
  0xd4   : > { %p1142_p2 = pneg %p1141_p1  ;;  %p1148_p5 = por %p1147_p4, %p1146_p3 }
  0xd6   : > { %p1149_p6 = pnand %p1148_p5, %p1142_p2 }
  0xd8   : > { %1152 = shalt.err (!%p1149_p6)
}
  0xd9   : > { %s1153_s15 = scalar_lea.hbm %s984_s29, %s1726_s21  ;;  %s1157_s9 = scalar_lea.hbm %s1777_s3, 4480 }
  0xda   : > { %p1154_p7 = scmp.ne.s32.totalorder %s984_s29, %s1153_s15  ;;  %p1158_p11 = scmp.lt.s32.totalorder %s984_s29, %s1777_s3 }
  0xdb   : > { %p1159_p12 = scmp.lt.s32.totalorder %s1157_s9, %s1153_s15 }
  0xdc   : > { %p1155_p9 = pnand %p1154_p7, %p1070_p13 }
  0xdd   : > { %p1160_p0 = por %p1159_p12, %p1158_p11 }
  0xde   : > { %p1156_p10 = pneg %p1155_p9 }
  0xe0   : > { %p1161_p1 = pnand %p1160_p0, %p1156_p10 }
  0xe2   : > { %1164 = shalt.err (!%p1161_p1)
}
  0xe3   : > { %990 = dma.vmem_to_hbm [thread:$0]  (%p1070_p13), %s988_s27, %s1726_s21, %s984_s29, %s1721_s18  }
  0xe4 PF: > { %p1083_p2 = scmp.ge.s32.totalorder %s1215_s17, 2  ;;  %s999_s19 = sand.u32 1, %s1195_s12  }
  0xe5   : > { %s1000_s23 = scalar_lea.sflag [#allocation3], %s999_s19 }
  0xe6   : > { %p1080_p3 = pnand %p1083_p2, %p1288_p8 }
  0xe8   : > { %p1081_p4 = pneg %p1080_p3 }
  0xea   : > { %1190 = dma.done.wait (%p1081_p4), %s1000_s23, 2304  }
  0xeb   : > { %1192 = vsyncadd (%p1081_p4), %s1000_s23, 4294964992  ;;  %s16_s17 = sadd.s32 1, %s1215_s17   ;;  %s1804_s12 = smov %s1199_s13 }
  0xec   : > { %p13_p5 = scmp.ge.s32.totalorder %s16_s17, 4   ;;  %s1805_s13 = smov %s1203_s14 }
  0xed   : > { %s1806_s14 = smov %s1294_s25  ;;  %s1807_s15 = smov %s1211_s16 }
  0xee   : > { %s1808_s16 = smov %s1810_s20  ;;  %15 = sbr.rel (!%p13_p5) target bundleno = 4 (0x4), region = 67 }
  0xf3   :  { %1005 = vsyncpa [#allocation3], 1 }
  0xf4   :  { %1007 = vsyncpa [#allocation3 + $0x1], 1 }

</bundles_post_ra>
